<compile_context>
chip_gen: v7x
topology: tpu7x:2x2x1
jax: 0.10.0
libtpu: 0.0.40
codegen_flags: <defaults>
</compile_context>

<pallas_src>
import jax
import jax.numpy as jnp
from jax.experimental import pallas as pl
from jax.experimental.pallas import tpu as pltpu

NUM_QUBITS = 4
NUM_CLASS = 3            # num_sentiment inferred from dataset dir; fixed here (synthetic)
DIM = 2 ** NUM_QUBITS    # state-vector dimension


def classifier_kernel(state_ref, w_ref, b_ref, out_ref):
    # state_ref: (2*DIM, blk) VMEM   rows [0,DIM)=real, [DIM,2*DIM)=imag
    # w_ref:     (NUM_CLASS, NUM_QUBITS)  SMEM (scalar weights)
    # b_ref:     (NUM_CLASS,)             SMEM (scalar bias)
    # out_ref:   (NUM_CLASS, blk) VMEM
    re = state_ref[0:DIM, :]
    im = state_ref[DIM:2 * DIM, :]
    probs = re * re + im * im                                   # (16, blk) VPU

    # Pauli-Z expectation per qubit (qubit 0 = MSB of the state index k):
    # 4-level butterfly of contiguous sublane slices -- no iota/shift/select.
    top, bot = probs[0:8, :], probs[8:16, :]                    # split on bit0
    ev0 = jnp.sum(top - bot, axis=0, keepdims=True)             # (1, blk)
    s = top + bot                                               # (8, blk) marginal over bit0
    t1, b1 = s[0:4, :], s[4:8, :]                               # split on bit1
    ev1 = jnp.sum(t1 - b1, axis=0, keepdims=True)
    s2 = t1 + b1                                                # (4, blk)
    t2, b2 = s2[0:2, :], s2[2:4, :]                             # split on bit2
    ev2 = jnp.sum(t2 - b2, axis=0, keepdims=True)
    s3 = t2 + b2                                                # (2, blk)
    ev3 = s3[0:1, :] - s3[1:2, :]                               # split on bit3 (LSB)

    ev = [ev0, ev1, ev2, ev3]                                   # NUM_QUBITS x (1, blk)

    # Softmax across the NUM_QUBITS expectation values (pure lane-wise VPU/EUP).
    m = jnp.maximum(jnp.maximum(ev0, ev1), jnp.maximum(ev2, ev3))
    exps = [jnp.exp(v - m) for v in ev]
    denom = exps[0] + exps[1] + exps[2] + exps[3]
    inv = pl.reciprocal(denom, approx=True)                     # EUP vrcp
    inv = inv * (2.0 - denom * inv)                             # Newton step -> f32-exact
    soft = [e * inv for e in exps]

    # Linear(num_qubits -> num_class) as scalar-weight MACs (no MXU for 4x3).
    rows = []
    for c in range(NUM_CLASS):                                  # static unroll (3)
        acc = soft[0] * w_ref[c, 0]
        for q in range(1, NUM_QUBITS):
            acc = acc + soft[q] * w_ref[c, q]
        rows.append(acc + b_ref[c])

    # One coalesced lane-dense store of the whole (NUM_CLASS, blk) block.
    out_ref[...] = jnp.concatenate(rows, axis=0).astype(out_ref.dtype)


def classifier_forward(state, w, b, *, block_b=32768):
    """Classifier forward on a packed state.

    state : (2*DIM, B) float32 -- rows [0, DIM) real amplitudes, [DIM, 2*DIM)
            imaginary amplitudes, batch on the (lane-dense) last axis.  This is
            the layout the producing state-prep kernel should emit directly.
    w     : (NUM_CLASS, NUM_QUBITS) float32 (PyTorch Linear weight)
    b     : (NUM_CLASS,) float32
    returns (NUM_CLASS, B) float32 -- transposed relative to the PyTorch
            (B, NUM_CLASS) layout; values identical.
    """
    two_dim, B = state.shape
    assert two_dim == 2 * DIM

    # Batch tile: as large as block_b, but keep >= ~4 grid steps when B allows
    # so the "parallel" axis has work to shard across v7x's 2 TensorCores.
    b128 = -(-B // 128) * 128
    blk = min(block_b, b128)
    quarter = max(128, (b128 // 4) // 128 * 128)
    blk = max(128, min(blk, quarter))
    b_pad = -(-B // blk) * blk

    if b_pad != B:
        # Only hit when B is not a multiple of the tile; zero columns produce
        # harmless uniform-softmax values that are sliced off below.
        state = jnp.pad(state, ((0, 0), (0, b_pad - B)))

    out = pl.pallas_call(
        classifier_kernel,
        out_shape=jax.ShapeDtypeStruct((NUM_CLASS, b_pad), jnp.float32),
        grid=(b_pad // blk,),
        in_specs=[
            pl.BlockSpec((2 * DIM, blk), lambda i: (0, i)),
            pl.BlockSpec(memory_space=pltpu.MemorySpace.SMEM),
            pl.BlockSpec(memory_space=pltpu.MemorySpace.SMEM),
        ],
        out_specs=pl.BlockSpec((NUM_CLASS, blk), lambda i: (0, i)),
        compiler_params=pltpu.CompilerParams(
            dimension_semantics=("parallel",),      # megacore sharding on v7x
            vmem_limit_bytes=32 * 1024 * 1024,      # safe on v5e/v6e/v7x
        ),
    )(state, w, b)

    return out if b_pad == B else out[:, :B]


def make_z_sign_matrix(num_qubits):
    """signs[k, i] = (-1)**bit_i(k), qubit 0 = most-significant bit."""
    dim = 2 ** num_qubits
    k = jnp.arange(dim)[:, None]
    i = jnp.arange(num_qubits)[None, :]
    bits = (k >> (num_qubits - 1 - i)) & 1
    return jnp.where(bits == 0, 1.0, -1.0).astype(jnp.float32)


def reference_forward(state_re, state_im, w, b):
    """Pure-JAX reference in PyTorch layout: (B, NUM_CLASS)."""
    probs = state_re ** 2 + state_im ** 2
    signs = make_z_sign_matrix(NUM_QUBITS)
    expvals = probs @ signs
    soft = jax.nn.softmax(expvals, axis=-1)
    return soft @ w.T + b


if __name__ == "__main__":
    key = jax.random.PRNGKey(0)
    k_re, k_im, k_w, k_b = jax.random.split(key, 4)

    B = 8  # batch

    # deterministic random (normalized) quantum state amplitudes
    re = jax.random.normal(k_re, (B, DIM), dtype=jnp.float32)
    im = jax.random.normal(k_im, (B, DIM), dtype=jnp.float32)
    norm = jnp.sqrt(jnp.sum(re ** 2 + im ** 2, axis=-1, keepdims=True))
    re = re / norm
    im = im / norm

    # deterministic Linear(num_qubits, num_class) init (PyTorch-style uniform)
    bound = 1.0 / (NUM_QUBITS ** 0.5)
    w = jax.random.uniform(k_w, (NUM_CLASS, NUM_QUBITS),
                           minval=-bound, maxval=bound, dtype=jnp.float32)
    b = jax.random.uniform(k_b, (NUM_CLASS,),
                           minval=-bound, maxval=bound, dtype=jnp.float32)

    # Packed producer layout (2*DIM, B).  In production the state-prep kernel
    # emits this directly; building it here is test-harness input construction,
    # not part of the classifier path.
    state_packed = jnp.concatenate([re.T, im.T], axis=0)

    out = classifier_forward(state_packed, w, b)        # (NUM_CLASS, B)
    out = jax.block_until_ready(out)

    ref = reference_forward(re, im, w, b)               # (B, NUM_CLASS)
    assert out.shape == (NUM_CLASS, B)
    assert jnp.allclose(out.T, ref, atol=1e-5, rtol=1e-5), "mismatch vs reference"

    print("KERNEL_OK")
</pallas_src>

<mosaic_0001>
module attributes {stable_mosaic.version = 11 : i64} {
  func.func @classifier_kernel(%arg0: i32, %arg1: memref<32x128xf32, #tpu.memory_space<vmem>>, %arg2: memref<3x4xf32, #tpu.memory_space<smem>>, %arg3: memref<3xf32, #tpu.memory_space<smem>>, %arg4: memref<3x128xf32, #tpu.memory_space<vmem>>) attributes {dimension_semantics = [#tpu.dimension_semantics<parallel>], iteration_bounds = array<i64: 1>, scalar_prefetch = 0 : i64, scratch_operands = 0 : i64, tpu.core_type = #tpu.core_type<tc>, window_params = [{transform_indices = @transform_0, window_bounds = array<i64: 32, 128>}, {transform_indices = @transform_1, window_bounds = array<i64: 3, 4>}, {transform_indices = @transform_2, window_bounds = array<i64: 3>}, {transform_indices = @transform_3, window_bounds = array<i64: 3, 128>}]} {
    %c0 = arith.constant 0 : index
    %c0_0 = arith.constant 0 : index
    %0 = vector.load %arg1[%c0, %c0_0] : memref<32x128xf32, #tpu.memory_space<vmem>>, vector<16x128xf32>
    %c16 = arith.constant 16 : index
    %c0_1 = arith.constant 0 : index
    %1 = vector.load %arg1[%c16, %c0_1] : memref<32x128xf32, #tpu.memory_space<vmem>>, vector<16x128xf32>
    %2 = arith.mulf %0, %0 : vector<16x128xf32>
    %3 = arith.mulf %1, %1 : vector<16x128xf32>
    %4 = arith.addf %2, %3 : vector<16x128xf32>
    %5 = vector.extract_strided_slice %4 {offsets = [0, 0], sizes = [8, 128], strides = [1, 1]} : vector<16x128xf32> to vector<8x128xf32>
    %6 = vector.extract_strided_slice %4 {offsets = [8, 0], sizes = [8, 128], strides = [1, 1]} : vector<16x128xf32> to vector<8x128xf32>
    %7 = arith.subf %5, %6 : vector<8x128xf32>
    %cst = arith.constant dense<0.000000e+00> : vector<128xf32>
    %8 = vector.multi_reduction <add>, %7, %cst [0] : vector<8x128xf32> to vector<128xf32>
    %9 = vector.shape_cast %8 : vector<128xf32> to vector<1x128xf32>
    %10 = arith.addf %5, %6 : vector<8x128xf32>
    %11 = vector.extract_strided_slice %10 {offsets = [0, 0], sizes = [4, 128], strides = [1, 1]} : vector<8x128xf32> to vector<4x128xf32>
    %12 = vector.extract_strided_slice %10 {offsets = [4, 0], sizes = [4, 128], strides = [1, 1]} : vector<8x128xf32> to vector<4x128xf32>
    %13 = arith.subf %11, %12 : vector<4x128xf32>
    %cst_2 = arith.constant dense<0.000000e+00> : vector<128xf32>
    %14 = vector.multi_reduction <add>, %13, %cst_2 [0] : vector<4x128xf32> to vector<128xf32>
    %15 = vector.shape_cast %14 : vector<128xf32> to vector<1x128xf32>
    %16 = arith.addf %11, %12 : vector<4x128xf32>
    %17 = vector.extract_strided_slice %16 {offsets = [0, 0], sizes = [2, 128], strides = [1, 1]} : vector<4x128xf32> to vector<2x128xf32>
    %18 = vector.extract_strided_slice %16 {offsets = [2, 0], sizes = [2, 128], strides = [1, 1]} : vector<4x128xf32> to vector<2x128xf32>
    %19 = arith.subf %17, %18 : vector<2x128xf32>
    %cst_3 = arith.constant dense<0.000000e+00> : vector<128xf32>
    %20 = vector.multi_reduction <add>, %19, %cst_3 [0] : vector<2x128xf32> to vector<128xf32>
    %21 = vector.shape_cast %20 : vector<128xf32> to vector<1x128xf32>
    %22 = arith.addf %17, %18 : vector<2x128xf32>
    %23 = vector.extract_strided_slice %22 {offsets = [0, 0], sizes = [1, 128], strides = [1, 1]} : vector<2x128xf32> to vector<1x128xf32>
    %24 = vector.extract_strided_slice %22 {offsets = [1, 0], sizes = [1, 128], strides = [1, 1]} : vector<2x128xf32> to vector<1x128xf32>
    %25 = arith.subf %23, %24 : vector<1x128xf32>
    %26 = arith.maximumf %9, %15 : vector<1x128xf32>
    %27 = arith.maximumf %21, %25 : vector<1x128xf32>
    %28 = arith.maximumf %26, %27 : vector<1x128xf32>
    %29 = arith.subf %9, %28 : vector<1x128xf32>
    %30 = math.exp %29 : vector<1x128xf32>
    %31 = arith.subf %15, %28 : vector<1x128xf32>
    %32 = math.exp %31 : vector<1x128xf32>
    %33 = arith.subf %21, %28 : vector<1x128xf32>
    %34 = math.exp %33 : vector<1x128xf32>
    %35 = arith.subf %25, %28 : vector<1x128xf32>
    %36 = math.exp %35 : vector<1x128xf32>
    %37 = arith.addf %30, %32 : vector<1x128xf32>
    %38 = arith.addf %37, %34 : vector<1x128xf32>
    %39 = arith.addf %38, %36 : vector<1x128xf32>
    %40 = tpu.reciprocal %39 {approx = true} : vector<1x128xf32> -> vector<1x128xf32>
    %41 = arith.mulf %39, %40 : vector<1x128xf32>
    %cst_4 = arith.constant 2.000000e+00 : f32
    %42 = vector.broadcast %cst_4 : f32 to vector<1x128xf32>
    %43 = arith.subf %42, %41 : vector<1x128xf32>
    %44 = arith.mulf %40, %43 : vector<1x128xf32>
    %45 = arith.mulf %30, %44 : vector<1x128xf32>
    %46 = arith.mulf %32, %44 : vector<1x128xf32>
    %47 = arith.mulf %34, %44 : vector<1x128xf32>
    %48 = arith.mulf %36, %44 : vector<1x128xf32>
    %c0_5 = arith.constant 0 : index
    %c0_6 = arith.constant 0 : index
    %49 = memref.load %arg2[%c0_5, %c0_6] : memref<3x4xf32, #tpu.memory_space<smem>>
    %50 = vector.broadcast %49 : f32 to vector<1x128xf32>
    %51 = arith.mulf %45, %50 : vector<1x128xf32>
    %c0_7 = arith.constant 0 : index
    %c1 = arith.constant 1 : index
    %52 = memref.load %arg2[%c0_7, %c1] : memref<3x4xf32, #tpu.memory_space<smem>>
    %53 = vector.broadcast %52 : f32 to vector<1x128xf32>
    %54 = arith.mulf %46, %53 : vector<1x128xf32>
    %55 = arith.addf %51, %54 : vector<1x128xf32>
    %c0_8 = arith.constant 0 : index
    %c2 = arith.constant 2 : index
    %56 = memref.load %arg2[%c0_8, %c2] : memref<3x4xf32, #tpu.memory_space<smem>>
    %57 = vector.broadcast %56 : f32 to vector<1x128xf32>
    %58 = arith.mulf %47, %57 : vector<1x128xf32>
    %59 = arith.addf %55, %58 : vector<1x128xf32>
    %c0_9 = arith.constant 0 : index
    %c3 = arith.constant 3 : index
    %60 = memref.load %arg2[%c0_9, %c3] : memref<3x4xf32, #tpu.memory_space<smem>>
    %61 = vector.broadcast %60 : f32 to vector<1x128xf32>
    %62 = arith.mulf %48, %61 : vector<1x128xf32>
    %63 = arith.addf %59, %62 : vector<1x128xf32>
    %c0_10 = arith.constant 0 : index
    %64 = memref.load %arg3[%c0_10] : memref<3xf32, #tpu.memory_space<smem>>
    %65 = vector.broadcast %64 : f32 to vector<1x128xf32>
    %66 = arith.addf %63, %65 : vector<1x128xf32>
    %c1_11 = arith.constant 1 : index
    %c0_12 = arith.constant 0 : index
    %67 = memref.load %arg2[%c1_11, %c0_12] : memref<3x4xf32, #tpu.memory_space<smem>>
    %68 = vector.broadcast %67 : f32 to vector<1x128xf32>
    %69 = arith.mulf %45, %68 : vector<1x128xf32>
    %c1_13 = arith.constant 1 : index
    %c1_14 = arith.constant 1 : index
    %70 = memref.load %arg2[%c1_13, %c1_14] : memref<3x4xf32, #tpu.memory_space<smem>>
    %71 = vector.broadcast %70 : f32 to vector<1x128xf32>
    %72 = arith.mulf %46, %71 : vector<1x128xf32>
    %73 = arith.addf %69, %72 : vector<1x128xf32>
    %c1_15 = arith.constant 1 : index
    %c2_16 = arith.constant 2 : index
    %74 = memref.load %arg2[%c1_15, %c2_16] : memref<3x4xf32, #tpu.memory_space<smem>>
    %75 = vector.broadcast %74 : f32 to vector<1x128xf32>
    %76 = arith.mulf %47, %75 : vector<1x128xf32>
    %77 = arith.addf %73, %76 : vector<1x128xf32>
    %c1_17 = arith.constant 1 : index
    %c3_18 = arith.constant 3 : index
    %78 = memref.load %arg2[%c1_17, %c3_18] : memref<3x4xf32, #tpu.memory_space<smem>>
    %79 = vector.broadcast %78 : f32 to vector<1x128xf32>
    %80 = arith.mulf %48, %79 : vector<1x128xf32>
    %81 = arith.addf %77, %80 : vector<1x128xf32>
    %c1_19 = arith.constant 1 : index
    %82 = memref.load %arg3[%c1_19] : memref<3xf32, #tpu.memory_space<smem>>
    %83 = vector.broadcast %82 : f32 to vector<1x128xf32>
    %84 = arith.addf %81, %83 : vector<1x128xf32>
    %c2_20 = arith.constant 2 : index
    %c0_21 = arith.constant 0 : index
    %85 = memref.load %arg2[%c2_20, %c0_21] : memref<3x4xf32, #tpu.memory_space<smem>>
    %86 = vector.broadcast %85 : f32 to vector<1x128xf32>
    %87 = arith.mulf %45, %86 : vector<1x128xf32>
    %c2_22 = arith.constant 2 : index
    %c1_23 = arith.constant 1 : index
    %88 = memref.load %arg2[%c2_22, %c1_23] : memref<3x4xf32, #tpu.memory_space<smem>>
    %89 = vector.broadcast %88 : f32 to vector<1x128xf32>
    %90 = arith.mulf %46, %89 : vector<1x128xf32>
    %91 = arith.addf %87, %90 : vector<1x128xf32>
    %c2_24 = arith.constant 2 : index
    %c2_25 = arith.constant 2 : index
    %92 = memref.load %arg2[%c2_24, %c2_25] : memref<3x4xf32, #tpu.memory_space<smem>>
    %93 = vector.broadcast %92 : f32 to vector<1x128xf32>
    %94 = arith.mulf %47, %93 : vector<1x128xf32>
    %95 = arith.addf %91, %94 : vector<1x128xf32>
    %c2_26 = arith.constant 2 : index
    %c3_27 = arith.constant 3 : index
    %96 = memref.load %arg2[%c2_26, %c3_27] : memref<3x4xf32, #tpu.memory_space<smem>>
    %97 = vector.broadcast %96 : f32 to vector<1x128xf32>
    %98 = arith.mulf %48, %97 : vector<1x128xf32>
    %99 = arith.addf %95, %98 : vector<1x128xf32>
    %c2_28 = arith.constant 2 : index
    %100 = memref.load %arg3[%c2_28] : memref<3xf32, #tpu.memory_space<smem>>
    %101 = vector.broadcast %100 : f32 to vector<1x128xf32>
    %102 = arith.addf %99, %101 : vector<1x128xf32>
    %103 = tpu.concatenate %66, %84, %102 in 0 : vector<1x128xf32>, vector<1x128xf32>, vector<1x128xf32> -> vector<3x128xf32>
    %c0_29 = arith.constant 0 : index
    %c0_30 = arith.constant 0 : index
    %104 = vector.load %arg4[%c0_29, %c0_30] : memref<3x128xf32, #tpu.memory_space<vmem>>, vector<3x128xf32>
    tpu.vector_store %arg4[%c0_29, %c0_30], %103 {strides = array<i32>} : memref<3x128xf32, #tpu.memory_space<vmem>>, vector<3x128xf32>,
    return
  }
  func.func @transform_0(%arg0: i32) -> (i32, i32) {
    %c0_i32 = arith.constant 0 : i32
    %c0_i32_0 = arith.constant 0 : i32
    return %c0_i32, %arg0 : i32, i32
  }
  func.func @transform_1(%arg0: i32) -> (i32, i32) {
    %c0_i32 = arith.constant 0 : i32
    %c0_i32_0 = arith.constant 0 : i32
    %c0_i32_1 = arith.constant 0 : i32
    return %c0_i32, %c0_i32_0 : i32, i32
  }
  func.func @transform_2(%arg0: i32) -> i32 {
    %c0_i32 = arith.constant 0 : i32
    %c0_i32_0 = arith.constant 0 : i32
    return %c0_i32 : i32
  }
  func.func @transform_3(%arg0: i32) -> (i32, i32) {
    %c0_i32 = arith.constant 0 : i32
    %c0_i32_0 = arith.constant 0 : i32
    return %c0_i32, %arg0 : i32, i32
  }
}

</mosaic_0001>

<bundles_post_ra>
// kernel: tpu_custom_call.1
= control target key start
LH: loop header
LB: loop body
LE: loop exit
PB: predicated region body
PF: predicated region fallthrough
CT: control target
= control target key end

     0   :  { %8 = vsyncpa [#allocation3], 0  ;;  %s419_s0 = inlined_call_operand.hbm [shape: f32[32,128], index: 0, kind: input, shape index: {}]   ;;  %s420_s1 = inlined_call_operand.hbm [shape: f32[3,4], index: 1, kind: input, shape index: {}]   ;;  %s421_s2 = inlined_call_operand.vmem [shape: f32[3], index: 2, kind: input, shape index: {}]   ;;  %s422_s3 = inlined_call_operand.hbm [shape: f32[3,128], index: 3, kind: output, shape index: {}]  }
   0x1   :  { %9 = vsyncpa [#allocation5], 0 }
   0x2   :  { %10 = vsyncpa [#allocation6], 0 }
   0x3   :  { %11 = vsyncpa [#allocation4], 0  ;;  %s310_s12 = smov [#allocation2]   ;;  %s236_s16 = scalar_lea.hbm %s419_s0, 512 }
   0x4   :  { %s17_s13 = sshll.u32 %s310_s12, 4  ;;  %p237_p0 = scmp.ne.s32.totalorder %s419_s0, %s236_s16  ;;  %s18_s13 = int_to_ptr.vmem [resolvable:$true] %s17_s13 }
   0x5   :  { %p240_p1 = scmp.lt.u32.totalorder %s236_s16, %s419_s0 }
   0x7   :  { %p242_p2 = pnand %p240_p1, %p237_p0 }
   0x9   :  { %245 = shalt.err (!%p242_p2)
}
   0xa   :  { %s246_s21 = scalar_lea.vmem %s18_s13, 512  ;;  %p251_p4 = scmp.lt.s32.totalorder %s18_s13, %s18_s13 }
   0xb   :  { %p247_p3 = scmp.ne.s32.totalorder %s18_s13, %s246_s21  ;;  %p252_p5 = scmp.lt.s32.totalorder %s246_s21, %s246_s21 }
   0xd   :  { %p253_p6 = por %p252_p5, %p251_p4 }
   0xf   :  { %p254_p7 = pnand %p253_p6, %p247_p3 }
  0x11   :  { %257 = shalt.err (!%p254_p7)
}
  0x12   :  { %s311_s22 = smov 128   ;;  %s312_s23 = smov 8  }
  0x13   :  { %23 = dma.hbm_to_vmem [thread:$0]  %s419_s0, 512, %s18_s13, [#allocation3], %s311_s22, %s311_s22, %s312_s23  }
  0x14   :  { %s258_s28 = scalar_lea.hbm %s420_s1, 64 }
  0x15   :  { %p259_p8 = scmp.ne.s32.totalorder %s420_s1, %s258_s28  ;;  %p262_p9 = scmp.lt.u32.totalorder %s258_s28, %s420_s1 }
  0x17   :  { %p264_p10 = pnand %p262_p9, %p259_p8 }
  0x19   :  { %267 = shalt.err (!%p264_p10)
}
  0x1a   :  { %s313_s6 = smov [#allocation7]   ;;  %s38_s10 = sshll.u32 %s421_s2, 4  ;;  %s39_s10 = int_to_ptr.vmem [resolvable:$true] %s38_s10 }
  0x1b   :  { %31 = dma.hbm_to_smem %s420_s1, 64, %s313_s6, [#allocation5]  }
  0x1c   :  { %s268_s11 = scalar_lea.vmem %s39_s10, 16  ;;  %p273_p12 = scmp.lt.s32.totalorder %s39_s10, %s39_s10 }
  0x1d   :  { %p269_p11 = scmp.ne.s32.totalorder %s39_s10, %s268_s11  ;;  %p274_p13 = scmp.lt.s32.totalorder %s268_s11, %s268_s11 }
  0x1f   :  { %p275_p0 = por %p274_p13, %p273_p12 }
  0x21   :  { %p276_p1 = pnand %p275_p0, %p269_p11 }
  0x23   :  { %279 = shalt.err (!%p276_p1)
}
  0x24   :  { %s314_s12 = smov [#allocation8]  }
  0x25   :  { %41 = dma.vmem_to_smem %s39_s10, 16, %s314_s12, [#allocation6]  }
  0x26   :  { %302 = dma.done.wait [#allocation3], 512  }
  0x27   :  { %303 = vsyncadd [#allocation3], 4294966784 }
  0x28   :  { %304 = dma.done.wait [#allocation5], 64  }
  0x29   :  { %305 = vsyncadd [#allocation5], 4294967232 }
  0x2a   :  { %306 = dma.done.wait [#allocation6], 16  }
  0x2b   :  { %307 = vsyncadd [#allocation6], 4294967280 }
  0x2c   :  { %51 = sfence }
  0x2d   :  { %v52_v0 = vld [vmem:[#allocation2] sm:$0xff]  ;;  %v53_v1 = vld [vmem:[#allocation2 + $0x8] sm:$0xff]  ;;  %v54_v2 = vld [vmem:[#allocation2 + $0x10] sm:$0xff]  ;;  %vm74_vm0 = vcmask 1043456   ;;  %vm87_vm1 = vcmask 1041408   ;;  %s364_s1 = sld [smem:[#allocation7]] }
  0x2e   :  { %v55_v3 = vld [vmem:[#allocation2 + $0x18] sm:$0xff]  ;;  %v56_v4 = vmul.f32 %v52_v0, %v52_v0  ;;  %v57_v5 = vmul.f32 %v53_v1, %v53_v1  ;;  %v58_v6 = vmul.f32 %v54_v2, %v54_v2  ;;  %s366_s2 = sld [smem:[#allocation7 + $0x1]]  ;;  %s368_s13 = sld [smem:[#allocation7 + $0x2]]  ;;  %vm186_vm2 = vcmask 1040384  }
  0x2f   :  { %v59_v7 = vmul.f32 %v55_v3, %v55_v3  ;;  %s370_s14 = sld [smem:[#allocation7 + $0x3]]  ;;  %s372_s15 = sld [smem:[#allocation7 + $0x80]] }
  0x30   :  { %v60_v8 = vadd.f32 %v58_v6, %v56_v4  ;;  %s374_s16 = sld [smem:[#allocation7 + $0x81]]  ;;  %s376_s17 = sld [smem:[#allocation7 + $0x82]] }
  0x31   :  { %v61_v9 = vadd.f32 %v59_v7, %v57_v5  ;;  %s378_s18 = sld [smem:[#allocation7 + $0x83]]  ;;  %s380_s19 = sld [smem:[#allocation7 + $0x100]] }
  0x32   :  { %s382_s20 = sld [smem:[#allocation7 + $0x101]]  ;;  %s384_s21 = sld [smem:[#allocation7 + $0x102]] }
  0x33   :  { %v62_v10 = vsub.f32 %v60_v8, %v61_v9  ;;  %v69_v11 = vadd.f32 %v61_v9, %v60_v8  ;;  %s386_s22 = sld [smem:[#allocation7 + $0x103]]  ;;  %v127_v62 = vstv %s364_s1  ;;  %s395_s23 = sld [smem:[#allocation8]] }
  0x34   :  { %v130_v63 = vstv %s366_s2  ;;  %v134_v0 = vstv %s368_s13  ;;  %s398_s24 = sld [smem:[#allocation8 + $0x1]]  ;;  %s219_s25 = sld [smem:[#allocation8 + $0x2]] }
  0x35   :  { %v63_v12 = vrot.slane %v62_v10, 4  ;;  %v71_v13 = vrot.slane %v69_v11, 4  ;;  %v138_v1 = vstv %s370_s14  ;;  %v145_v2 = vstv %s372_s15  ;;  %s315_s26 = smov [#allocation9]  }
  0x36   :  { %v148_v3 = vstv %s374_s16  ;;  %v152_v4 = vstv %s376_s17  ;;  %s196_s27 = sshll.u32 %s315_s26, 4  ;;  %s197_s27 = int_to_ptr.vmem [resolvable:$true] %s196_s27 }
  0x37   :  { %v64_v14 = vadd.f32 %v63_v12, %v62_v10  ;;  %v73_v15 = vsub.f32 %v69_v11, %v71_v13  ;;  %v82_v16 = vadd.f32 %v71_v13, %v69_v11  ;;  %v156_v8 = vstv %s378_s18  ;;  %s280_s28 = scalar_lea.vmem %s197_s27, 64  ;;  %p285_p3 = scmp.lt.s32.totalorder %s197_s27, %s197_s27 }
  0x38   :  { %v163_v10 = vstv %s380_s19  ;;  %v166_v11 = vstv %s382_s20  ;;  %v170_v12 = vstv %s384_s21  ;;  %p281_p2 = scmp.ne.s32.totalorder %s197_s27, %s280_s28  ;;  %p286_p4 = scmp.lt.s32.totalorder %s280_s28, %s280_s28 }
  0x39   :  { %v65_v17 = vrot.slane %v64_v14, 2  ;;  %v75_v18 = vsel %vm74_vm0, %v73_v15, 0.0  ;;  %v84_v19 = vrot.slane %v82_v16, 2 }
  0x3a   :  { %v76_v20 = vrot.slane %v75_v18, 4  ;;  %p287_p5 = por %p286_p4, %p285_p3 }
  0x3b   :  { %v86_v21 = vsub.f32 %v82_v16, %v84_v19  ;;  %v66_v22 = vadd.f32 %v65_v17, %v64_v14  ;;  %v95_v27 = vadd.f32 %v84_v19, %v82_v16  ;;  %v174_v16 = vstv %s386_s22 }
  0x3c   :  { %v77_v23 = vadd.f32 %v76_v20, %v75_v18  ;;  %p288_p6 = pnand %p287_p5, %p281_p2 }
  0x3d   :  { %v88_v24 = vsel %vm87_vm1, %v86_v21, 0.0  ;;  %v67_v28 = vrot.slane %v66_v22, 1  ;;  %v97_v33 = vrot.slane %v95_v27, 1 }
  0x3e   :  { %v78_v25 = vrot.slane %v77_v23, 2  ;;  %v89_v26 = vrot.slane %v88_v24, 4 }
  0x3f   :  { %v68_v34 = vadd.f32 %v67_v28, %v66_v22  ;;  %v99_v38 = vsub.f32 %v95_v27, %v97_v33  ;;  %v160_v33 = vstv %s398_s24 }
  0x40   :  { %v79_v29 = vadd.f32 %v78_v25, %v77_v23  ;;  %v90_v30 = vadd.f32 %v89_v26, %v88_v24 }
  0x42   :  { %v80_v31 = vrot.slane %v79_v29, 1  ;;  %v91_v32 = vrot.slane %v90_v30, 2 }
  0x44   :  { %v81_v35 = vadd.f32 %v80_v31, %v79_v29  ;;  %v92_v36 = vadd.f32 %v91_v32, %v90_v30  ;;  %v142_v32 = vstv %s395_s23 }
  0x46   :  { %v93_v37 = vrot.slane %v92_v36, 1  ;;  %v100_v40 = vmax.f32 %v68_v34, %v81_v35 }
  0x48   :  { %v94_v39 = vadd.f32 %v93_v37, %v92_v36  ;;  %v178_v36 = vstv %s219_s25 }
  0x4a   :  { %v101_v41 = vmax.f32 %v94_v39, %v99_v38 }
  0x4c   :  { %v102_v42 = vmax.f32 %v100_v40, %v101_v41 }
  0x4e   :  { %v103_v43 = vsub.f32 %v68_v34, %v102_v42  ;;  %v106_v44 = vsub.f32 %v81_v35, %v102_v42  ;;  %v109_v45 = vsub.f32 %v94_v39, %v102_v42  ;;  %v112_v46 = vsub.f32 %v99_v38, %v102_v42 }
  0x50   :  { %v104_v47 = vmul.f32 1.442695, %v103_v43  ;;  %v107_v48 = vmul.f32 1.442695, %v106_v44  ;;  %v110_v49 = vmul.f32 1.442695, %v109_v45 }
  0x51   :  { %v113_v50 = vmul.f32 1.442695, %v112_v46 }
  0x52   :  { %226 = vpow2.f32 %v104_v47 }
  0x53   :  { %228 = vpow2.f32 %v107_v48 }
  0x54   :  { %230 = vpow2.f32 %v110_v49 }
  0x55   :  { %232 = vpow2.f32 %v113_v50 }
  0x5c   :  { %v227_v51 = vpop.eup %226 }
  0x5d   :  { %v229_v52 = vpop.eup %228 }
  0x5e   :  { %v231_v53 = vpop.eup %230  ;;  %v115_v54 = vadd.f32 %v229_v52, %v227_v51 }
  0x5f   :  { %v233_v55 = vpop.eup %232 }
  0x60   :  { %v116_v56 = vadd.f32 %v231_v53, %v115_v54 }
  0x62   :  { %v117_v57 = vadd.f32 %v233_v55, %v116_v56 }
  0x64   :  { %234 = vrcp.f32 %v117_v57 }
  0x6e   :  { %v235_v58 = vpop.eup %234 }
  0x6f   :  { %v119_v59 = vmul.f32 %v235_v58, %v117_v57 }
  0x71   :  { %v120_v60 = vsub.f32 2.0, %v119_v59 }
  0x73   :  { %v121_v61 = vmul.f32 %v235_v58, %v120_v60 }
  0x75   :  { %v122_v5 = vmul.f32 %v227_v51, %v121_v61  ;;  %v123_v6 = vmul.f32 %v229_v52, %v121_v61  ;;  %v124_v7 = vmul.f32 %v231_v53, %v121_v61  ;;  %v125_v9 = vmul.f32 %v233_v55, %v121_v61 }
  0x77   :  { %v128_v13 = vmul.f32 %v127_v62, %v122_v5  ;;  %v131_v14 = vmul.f32 %v130_v63, %v123_v6  ;;  %v135_v15 = vmul.f32 %v134_v0, %v124_v7  ;;  %v139_v17 = vmul.f32 %v138_v1, %v125_v9 }
  0x78   :  { %v146_v18 = vmul.f32 %v145_v2, %v122_v5  ;;  %v149_v19 = vmul.f32 %v148_v3, %v123_v6  ;;  %v153_v20 = vmul.f32 %v152_v4, %v124_v7  ;;  %v164_v22 = vmul.f32 %v163_v10, %v122_v5 }
  0x79   :  { %v132_v21 = vadd.f32 %v131_v14, %v128_v13  ;;  %v167_v23 = vmul.f32 %v166_v11, %v123_v6  ;;  %v171_v24 = vmul.f32 %v170_v12, %v124_v7  ;;  %v157_v26 = vmul.f32 %v156_v8, %v125_v9 }
  0x7a   :  { %v150_v25 = vadd.f32 %v149_v19, %v146_v18  ;;  %v175_v29 = vmul.f32 %v174_v16, %v125_v9 }
  0x7b   :  { %v136_v27 = vadd.f32 %v135_v15, %v132_v21  ;;  %v168_v28 = vadd.f32 %v167_v23, %v164_v22 }
  0x7c   :  { %v154_v30 = vadd.f32 %v153_v20, %v150_v25 }
  0x7d   :  { %v140_v31 = vadd.f32 %v139_v17, %v136_v27  ;;  %v172_v34 = vadd.f32 %v171_v24, %v168_v28 }
  0x7e   :  { %v158_v35 = vadd.f32 %v157_v26, %v154_v30 }
  0x7f   :  { %v176_v37 = vadd.f32 %v175_v29, %v172_v34  ;;  %v143_v38 = vadd.f32 %v142_v32, %v140_v31 }
  0x80   :  { %v161_v39 = vadd.f32 %v160_v33, %v158_v35 }
  0x81   :  { %v179_v40 = vadd.f32 %v178_v36, %v176_v37 }
  0x82   :  { %v181_v41 = vrot.slane %v161_v39, 7 }
  0x83   :  { %v184_v42 = vrot.slane %v179_v40, 6 }
  0x84   :  { %v187_v43 = vsel %vm186_vm2, %v143_v38, %v181_v41 }
  0x85   :  { %v188_v44 = vsel %vm87_vm1, %v187_v43, %v184_v42 }
  0x86   :  { %189 = vst [vmem:[#allocation9] sm:$0x7] %v188_v44 }
  0x87   :  { %291 = shalt.err (!%p288_p6)
}
  0x88   :  { %s292_s4 = scalar_lea.hbm %s422_s3, 64 }
  0x89   :  { %p293_p7 = scmp.ne.s32.totalorder %s422_s3, %s292_s4  ;;  %p296_p8 = scmp.lt.u32.totalorder %s292_s4, %s422_s3 }
  0x8b   :  { %p298_p9 = pnand %p296_p8, %p293_p7 }
  0x8d   :  { %301 = shalt.err (!%p298_p9)
}
  0x8e   :  { %199 = dma.vmem_to_hbm [thread:$0]  %s197_s27, 64, %s422_s3, [#allocation4]  }
  0x8f   :  { %308 = dma.done.wait [#allocation4], 64  }
  0x90   :  { %309 = vsyncadd [#allocation4], 4294967232 }
  0x91   :  { %203 = vsyncpa [#allocation3], 1 }
  0x92   :  { %204 = vsyncpa [#allocation4], 1 }
  0x93   :  { %205 = vsyncpa [#allocation5], 1 }
  0x94   :  { %206 = vsyncpa [#allocation6], 1 }

</bundles_post_ra>
